<compile_context>
chip_gen: v7x
topology: tpu7x:2x2x1
jax: 0.10.0
libtpu: 0.0.40
codegen_flags: <defaults>
</compile_context>

<pallas_src>
import functools

import jax
import jax.numpy as jnp
from jax.experimental import pallas as pl
from jax.experimental.pallas import tpu as pltpu

_VMEM_LIMIT_BYTES = 48 * 1024 * 1024  # headroom under v7x's 64 MiB physical VMEM


def _round_up(x, m):
    return ((x + m - 1) // m) * m


def _pick_tile(dim, align, max_tile):
    """Return (tile, padded_dim): full (aligned) dim if it fits, else max_tile."""
    if dim <= max_tile:
        t = _round_up(dim, align)
        return t, t
    return max_tile, _round_up(dim, max_tile)


def _pad_to(arr, target_shape):
    pads = [(0, t - s) for s, t in zip(arr.shape, target_shape)]
    if any(p for _, p in pads):
        arr = jnp.pad(arr, pads)
    return arr


# ----------------------------------------------------------------------------
# Kernels
# ----------------------------------------------------------------------------
def _matmul_bias_kernel(x_ref, w_ref, b_ref, o_ref, acc_ref):
    # x: (tm, tk)  w: (tk, tn)  b: (1, tn)  o: (tm, tn)  acc: (tm, tn) f32
    @pl.when(pl.program_id(2) == 0)
    def _():
        acc_ref[...] = jnp.zeros_like(acc_ref)

    acc_ref[...] += jnp.dot(x_ref[...], w_ref[...],
                            preferred_element_type=jnp.float32)

    @pl.when(pl.program_id(2) == pl.num_programs(2) - 1)
    def _():
        o_ref[...] = (acc_ref[...] + b_ref[...].astype(jnp.float32)
                      ).astype(o_ref.dtype)


def _ensemble_bmm_kernel(x_ref, w_ref, b_ref, o_ref, acc_ref):
    # x: (te, tm, tk)  w: (te, tk, tn)  b: (te, 1, tn)  o/acc: (te, tm, tn)
    @pl.when(pl.program_id(3) == 0)
    def _():
        acc_ref[...] = jnp.zeros_like(acc_ref)

    acc_ref[...] += jnp.einsum('eij,ejk->eik', x_ref[...], w_ref[...],
                               preferred_element_type=jnp.float32)

    @pl.when(pl.program_id(3) == pl.num_programs(3) - 1)
    def _():
        o_ref[...] = (acc_ref[...] + b_ref[...].astype(jnp.float32)
                      ).astype(o_ref.dtype)


# ----------------------------------------------------------------------------
# Wrappers
# ----------------------------------------------------------------------------
def _ensemble_linear_2d(x, weight, bias, compute_dtype):
    """Shared-x path: fold ensemble into the lane (output) axis -> one matmul."""
    out_dtype = x.dtype
    E, K, N = weight.shape
    B = x.shape[0]
    EN = E * N

    # (E, K, N) -> (K, E*N);  (E, 1, N) -> (1, E*N)   (column index = e*N + n)
    w_fold = jnp.transpose(weight, (1, 0, 2)).reshape(K, EN)
    b_fold = bias.reshape(1, EN)

    if compute_dtype is not None:
        x = x.astype(compute_dtype)
        w_fold = w_fold.astype(compute_dtype)
        # bias stays f32: added once in the f32 accumulator at finalize.

    tm, Mp = _pick_tile(B, 8, 256)
    tn, Np = _pick_tile(EN, 128, 512)   # lane-dense output (multiple of 128)
    tk, Kp = _pick_tile(K, 8, 512)

    x_p = _pad_to(x, (Mp, Kp))
    w_p = _pad_to(w_fold, (Kp, Np))
    b_p = _pad_to(b_fold, (1, Np))

    grid = (Mp // tm, Np // tn, Kp // tk)
    bytes_accessed = (x_p.size * x_p.dtype.itemsize
                      + w_p.size * w_p.dtype.itemsize
                      + b_p.size * b_p.dtype.itemsize
                      + Mp * Np * jnp.dtype(out_dtype).itemsize)

    out = pl.pallas_call(
        _matmul_bias_kernel,
        out_shape=jax.ShapeDtypeStruct((Mp, Np), out_dtype),
        grid_spec=pltpu.PrefetchScalarGridSpec(
            num_scalar_prefetch=0,
            grid=grid,
            in_specs=[
                pl.BlockSpec((tm, tk), lambda m, n, k: (m, k)),
                pl.BlockSpec((tk, tn), lambda m, n, k: (k, n)),
                pl.BlockSpec((1, tn), lambda m, n, k: (0, n)),
            ],
            out_specs=pl.BlockSpec((tm, tn), lambda m, n, k: (m, n)),
            scratch_shapes=[pltpu.VMEM((tm, tn), jnp.float32)],
        ),
        compiler_params=pltpu.CompilerParams(
            dimension_semantics=("parallel", "parallel", "arbitrary"),
            vmem_limit_bytes=_VMEM_LIMIT_BYTES,
        ),
        cost_estimate=pl.CostEstimate(
            flops=2 * B * K * EN,
            transcendentals=0,
            bytes_accessed=bytes_accessed,
        ),
    )(x_p, w_p, b_p)

    out = out[:B, :EN]                               # drop padding
    return out.reshape(B, E, N).transpose(1, 0, 2)   # (E, B, N)


def _ensemble_linear_3d(x, weight, bias, compute_dtype):
    """Per-ensemble-x path: batched matmul over ensemble tiles."""
    out_dtype = x.dtype
    E, K, N = weight.shape
    B = x.shape[1]

    if compute_dtype is not None:
        x = x.astype(compute_dtype)
        weight = weight.astype(compute_dtype)

    te = min(E, 4)                      # ensemble members per grid step
    Ep = _round_up(E, te)
    tm, Bp = _pick_tile(B, 8, 128)
    tn, Np = _pick_tile(N, 128, 256)    # lane-dense output (multiple of 128)
    tk, Kp = _pick_tile(K, 8, 512)

    x_p = _pad_to(x, (Ep, Bp, Kp))
    w_p = _pad_to(weight, (Ep, Kp, Np))
    b_p = _pad_to(bias, (Ep, 1, Np))

    grid = (Ep // te, Bp // tm, Np // tn, Kp // tk)
    bytes_accessed = (x_p.size * x_p.dtype.itemsize
                      + w_p.size * w_p.dtype.itemsize
                      + b_p.size * b_p.dtype.itemsize
                      + Ep * Bp * Np * jnp.dtype(out_dtype).itemsize)

    out = pl.pallas_call(
        _ensemble_bmm_kernel,
        out_shape=jax.ShapeDtypeStruct((Ep, Bp, Np), out_dtype),
        grid_spec=pltpu.PrefetchScalarGridSpec(
            num_scalar_prefetch=0,
            grid=grid,
            in_specs=[
                pl.BlockSpec((te, tm, tk), lambda e, m, n, k: (e, m, k)),
                pl.BlockSpec((te, tk, tn), lambda e, m, n, k: (e, k, n)),
                pl.BlockSpec((te, 1, tn), lambda e, m, n, k: (e, 0, n)),
            ],
            out_specs=pl.BlockSpec((te, tm, tn), lambda e, m, n, k: (e, m, n)),
            scratch_shapes=[pltpu.VMEM((te, tm, tn), jnp.float32)],
        ),
        compiler_params=pltpu.CompilerParams(
            dimension_semantics=("parallel", "parallel", "parallel",
                                 "arbitrary"),
            vmem_limit_bytes=_VMEM_LIMIT_BYTES,
        ),
        cost_estimate=pl.CostEstimate(
            flops=2 * E * B * K * N,
            transcendentals=0,
            bytes_accessed=bytes_accessed,
        ),
    )(x_p, w_p, b_p)

    return out[:E, :B, :N]


def ensemble_linear(x, weight, bias, compute_dtype=None):
    """Pallas implementation of EnsembleLinear.forward.

    compute_dtype: optional dtype (e.g. jnp.bfloat16) for x/weight on the MXU;
    accumulation is always f32 and the output keeps x's original dtype.
    """
    E, K, N = weight.shape
    assert bias.shape == (E, 1, N)

    if x.ndim == 2:
        assert x.shape[1] == K
        return _ensemble_linear_2d(x, weight, bias, compute_dtype)
    elif x.ndim == 3:
        assert x.shape[0] == E and x.shape[2] == K
        return _ensemble_linear_3d(x, weight, bias, compute_dtype)
    else:
        raise ValueError(f"unsupported x.ndim={x.ndim}")


# ----------------------------------------------------------------------------
# Init / reference / test
# ----------------------------------------------------------------------------
def init_ensemble_linear_params(key, input_dim, output_dim, num_ensemble):
    """Deterministic synthetic init mirroring the PyTorch module's __init__."""
    std = 1.0 / (2.0 * input_dim ** 0.5)
    w = std * jax.random.truncated_normal(
        key, -2.0, 2.0, (num_ensemble, input_dim, output_dim), jnp.float32)
    b = jnp.zeros((num_ensemble, 1, output_dim), jnp.float32)
    return w, b


def _reference(x, weight, bias):
    if x.ndim == 2:
        y = jnp.einsum('ij,bjk->bik', x, weight)
    else:
        y = jnp.einsum('bij,bjk->bik', x, weight)
    return y + bias


if __name__ == "__main__":
    num_ensemble = 4
    batch = 8
    input_dim = 32
    output_dim = 16

    key = jax.random.PRNGKey(0)
    k_w, k_x2, k_x3 = jax.random.split(key, 3)

    weight, bias = init_ensemble_linear_params(
        k_w, input_dim, output_dim, num_ensemble)
    # bias is zeros in the module; perturb slightly so the bias path is exercised.
    bias = bias + 0.01 * jnp.arange(output_dim, dtype=jnp.float32)[None, None, :]

    fwd = jax.jit(ensemble_linear, static_argnames=("compute_dtype",))

    # 2-D input (shared x): folded into a single lane-dense matmul.
    x2 = jax.random.normal(k_x2, (batch, input_dim), jnp.float32)
    out2 = jax.block_until_ready(fwd(x2, weight, bias))
    ref2 = _reference(x2, weight, bias)
    assert out2.shape == (num_ensemble, batch, output_dim)
    assert out2.dtype == x2.dtype
    assert jnp.allclose(out2, ref2, atol=1e-5, rtol=1e-5)

    # 3-D input (per-ensemble x): ensemble-tiled batched matmul.
    x3 = jax.random.normal(k_x3, (num_ensemble, batch, input_dim), jnp.float32)
    out3 = jax.block_until_ready(fwd(x3, weight, bias))
    ref3 = _reference(x3, weight, bias)
    assert out3.shape == (num_ensemble, batch, output_dim)
    assert jnp.allclose(out3, ref3, atol=1e-5, rtol=1e-5)

    # bf16 compute path (f32 accumulate) — looser tolerance.
    out2_bf = jax.block_until_ready(
        fwd(x2, weight, bias, compute_dtype=jnp.bfloat16))
    assert out2_bf.dtype == jnp.float32
    assert jnp.allclose(out2_bf, ref2, atol=5e-2, rtol=5e-2)

    out3_bf = jax.block_until_ready(
        fwd(x3, weight, bias, compute_dtype=jnp.bfloat16))
    assert jnp.allclose(out3_bf, ref3, atol=5e-2, rtol=5e-2)

    print("KERNEL_OK")
</pallas_src>

<mosaic_0001>
module attributes {stable_mosaic.version = 11 : i64} {
  func.func @_matmul_bias_kernel(%arg0: i32, %arg1: i32, %arg2: i32, %arg3: memref<8x32xf32, #tpu.memory_space<vmem>>, %arg4: memref<32x128xf32, #tpu.memory_space<vmem>>, %arg5: memref<1x128xf32, #tpu.memory_space<vmem>>, %arg6: memref<8x128xf32, #tpu.memory_space<vmem>>, %arg7: memref<8x128xf32, #tpu.memory_space<vmem>>) attributes {dimension_semantics = [#tpu.dimension_semantics<parallel>, #tpu.dimension_semantics<parallel>, #tpu.dimension_semantics<arbitrary>], iteration_bounds = array<i64: 1, 1, 1>, scalar_prefetch = 0 : i64, scratch_operands = 1 : i64, tpu.core_type = #tpu.core_type<tc>, window_params = [{transform_indices = @transform_0, window_bounds = array<i64: 8, 32>}, {transform_indices = @transform_1, window_bounds = array<i64: 32, 128>}, {transform_indices = @transform_2, window_bounds = array<i64: 1, 128>}, {transform_indices = @transform_3, window_bounds = array<i64: 8, 128>}]} {
    %c0_i32 = arith.constant 0 : i32
    %0 = arith.cmpi eq, %arg2, %c0_i32 : i32
    %1 = arith.extui %0 : i1 to i32
    %c0_i32_0 = arith.constant 0 : i32
    %2 = arith.cmpi ne, %1, %c0_i32_0 : i32
    scf.if %2 {
      %cst_10 = arith.constant 0.000000e+00 : f32
      %12 = vector.broadcast %cst_10 : f32 to vector<8x128xf32>
      %c0_11 = arith.constant 0 : index
      %c0_12 = arith.constant 0 : index
      %13 = vector.load %arg7[%c0_11, %c0_12] : memref<8x128xf32, #tpu.memory_space<vmem>>, vector<8x128xf32>
      tpu.vector_store %arg7[%c0_11, %c0_12], %12 {strides = array<i32>} : memref<8x128xf32, #tpu.memory_space<vmem>>, vector<8x128xf32>,
    } else {
    }
    %c0 = arith.constant 0 : index
    %c0_1 = arith.constant 0 : index
    %3 = vector.load %arg7[%c0, %c0_1] : memref<8x128xf32, #tpu.memory_space<vmem>>, vector<8x128xf32>
    %c0_2 = arith.constant 0 : index
    %c0_3 = arith.constant 0 : index
    %4 = vector.load %arg3[%c0_2, %c0_3] : memref<8x32xf32, #tpu.memory_space<vmem>>, vector<8x32xf32>
    %c0_4 = arith.constant 0 : index
    %c0_5 = arith.constant 0 : index
    %5 = vector.load %arg4[%c0_4, %c0_5] : memref<32x128xf32, #tpu.memory_space<vmem>>, vector<32x128xf32>
    %cst = arith.constant dense<0.000000e+00> : vector<8x128xf32>
    %6 = tpu.matmul %4, %5, %cst {dimension_numbers = #tpu.dot_dimension_numbers<[1], [0], [0], [1], [0, 0, 1, 1], [], []>} : vector<8x32xf32>, vector<32x128xf32>, vector<8x128xf32> -> vector<8x128xf32>
    %7 = arith.addf %3, %6 : vector<8x128xf32>
    %c0_6 = arith.constant 0 : index
    %c0_7 = arith.constant 0 : index
    %8 = vector.load %arg7[%c0_6, %c0_7] : memref<8x128xf32, #tpu.memory_space<vmem>>, vector<8x128xf32>
    tpu.vector_store %arg7[%c0_6, %c0_7], %7 {strides = array<i32>} : memref<8x128xf32, #tpu.memory_space<vmem>>, vector<8x128xf32>,
    %c0_i32_8 = arith.constant 0 : i32
    %9 = arith.cmpi eq, %arg2, %c0_i32_8 : i32
    %10 = arith.extui %9 : i1 to i32
    %c0_i32_9 = arith.constant 0 : i32
    %11 = arith.cmpi ne, %10, %c0_i32_9 : i32
    scf.if %11 {
      %c0_10 = arith.constant 0 : index
      %c0_11 = arith.constant 0 : index
      %12 = vector.load %arg7[%c0_10, %c0_11] : memref<8x128xf32, #tpu.memory_space<vmem>>, vector<8x128xf32>
      %c0_12 = arith.constant 0 : index
      %c0_13 = arith.constant 0 : index
      %13 = vector.load %arg5[%c0_12, %c0_13] : memref<1x128xf32, #tpu.memory_space<vmem>>, vector<1x128xf32>
      %14 = vector.broadcast %13 : vector<1x128xf32> to vector<8x128xf32>
      %15 = arith.addf %12, %14 : vector<8x128xf32>
      %c0_14 = arith.constant 0 : index
      %c0_15 = arith.constant 0 : index
      %16 = vector.load %arg6[%c0_14, %c0_15] : memref<8x128xf32, #tpu.memory_space<vmem>>, vector<8x128xf32>
      tpu.vector_store %arg6[%c0_14, %c0_15], %15 {strides = array<i32>} : memref<8x128xf32, #tpu.memory_space<vmem>>, vector<8x128xf32>,
    } else {
    }
    return
  }
  func.func @transform_0(%arg0: i32, %arg1: i32, %arg2: i32) -> (i32, i32) {
    %c0_i32 = arith.constant 0 : i32
    return %arg0, %arg2 : i32, i32
  }
  func.func @transform_1(%arg0: i32, %arg1: i32, %arg2: i32) -> (i32, i32) {
    %c0_i32 = arith.constant 0 : i32
    return %arg2, %arg1 : i32, i32
  }
  func.func @transform_2(%arg0: i32, %arg1: i32, %arg2: i32) -> (i32, i32) {
    %c0_i32 = arith.constant 0 : i32
    %c0_i32_0 = arith.constant 0 : i32
    return %c0_i32, %arg1 : i32, i32
  }
  func.func @transform_3(%arg0: i32, %arg1: i32, %arg2: i32) -> (i32, i32) {
    %c0_i32 = arith.constant 0 : i32
    return %arg0, %arg1 : i32, i32
  }
}

</mosaic_0001>

<bundles_post_ra>
// kernel: ensemble_linear.1
= control target key start
LH: loop header
LB: loop body
LE: loop exit
PB: predicated region body
PF: predicated region fallthrough
CT: control target
= control target key end

     0   :  { %v145_v0 = vmov 0.0|0.0   ;;  %vm146_vm0 = vmmov 0   ;;  %v147_v4 = vmov 0.0   ;;  %vm25_vm1 = vcmask 261120   ;;  %s189_s1 = inlined_call_operand.vmem [shape: f32[32,128], index: 1, kind: input, shape index: {}]   ;;  %s190_s0 = inlined_call_operand.vmem [shape: f32[8,32], index: 0, kind: input, shape index: {}]   ;;  %s191_s2 = inlined_call_operand.vmem [shape: f32[1,128], index: 2, kind: input, shape index: {}]   ;;  %s192_s3 = inlined_call_operand.vmem [shape: f32[8,128], index: 3, kind: output, shape index: {}]  }
   0x1   :  { %136 = vmatprep.subr.bf16.mxu0 %v145_v0  ;;  %v21_v1 = vld [vmem:[%s189_s1] sm:$0xff]  ;;  %v22_v2 = vld [vmem:[%s189_s1 + $0x8] sm:$0xff]  ;;  %v23_v3 = vld [vmem:[%s189_s1 + $0x10] sm:$0xff]  ;;  %133 = vmatprep.mubr.msk.f32.mxu0 %vm146_vm0, %v147_v4 }
   0x2   :  { %v137_v5 = vpack.c.bf16 %v22_v2, %v21_v1  ;;  %v24_v6 = vld [vmem:[%s189_s1 + $0x18] sm:$0xff]  ;;  %v20_v8 = vld [vmem:[%s190_s0] sm:$0xff] }
   0x3   :  { %v140_v7 = vpack.c.bf16 %v24_v6, %v23_v3  ;;  %v119_v9 = vld [vmem:[%s191_s2] ss:$0 sm:$0xff] }
   0x4   :  { %138 = vmatpush3.bf16.msra.mxu0 %v137_v5 }
   0x5   :  { %139 = vmatprep.subr.bf16.mxu0 %v145_v0 }
   0x8   :  { %141 = vmatpush3.bf16.msra.mxu0 %v140_v7 }
   0xb   :  { %134 = vmatmul.mubr.msk.f32.vlgmr.msra.gmra.mrb[0].mxu0 %vm25_vm1, %v20_v8 }
  0xde   :  { %v95_v10 = vpop.f32.mrb[0].mxu0 }
  0xdf   :  { %v112_v11 = vadd.f32 %v119_v9, %v95_v10  ;;  %v135_v12 = vpop.f32.mrb[1].mxu0 }
  0xe1   :  { %113 = vst [vmem:[%s192_s3] sm:$0xff] %v112_v11 }

</bundles_post_ra>
